<compile_context>
chip_gen: v7x
topology: tpu7x:2x2x1
jax: 0.10.0
libtpu: 0.0.40
codegen_flags: <defaults>
</compile_context>

<pallas_src>
import functools

import numpy as np
import jax
import jax.numpy as jnp
from jax.experimental import pallas as pl
from jax.experimental.pallas import tpu as pltpu


def _haar_pair_matrix(W):
    """(2W, 2W) map: [x[2h,:] | x[2h+1,:]] @ M = [LL | LH | HL | HH] (each W/2)."""
    Wo = W // 2
    m = np.zeros((2 * W, 2 * W), np.float32)
    for j in range(Wo):
        t0, t1 = 2 * j, 2 * j + 1            # even/odd cols of the even (top) row
        b0, b1 = W + 2 * j, W + 2 * j + 1    # even/odd cols of the odd (bottom) row
        # LL: low over height, low over width
        m[t0, j] = 0.5; m[t1, j] = 0.5; m[b0, j] = 0.5; m[b1, j] = 0.5
        # LH: low over height, high over width
        m[t0, Wo + j] = 0.5; m[t1, Wo + j] = -0.5
        m[b0, Wo + j] = 0.5; m[b1, Wo + j] = -0.5
        # HL: high over height, low over width
        m[t0, W + j] = 0.5; m[t1, W + j] = 0.5
        m[b0, W + j] = -0.5; m[b1, W + j] = -0.5
        # HH: high over height, high over width
        m[t0, W + Wo + j] = 0.5; m[t1, W + Wo + j] = -0.5
        m[b0, W + Wo + j] = -0.5; m[b1, W + Wo + j] = 0.5
    return m


def _choose_group(H, W, lane_target=128):
    """Row-pairs grouped per super-row so the lane dim L = 2*g*W reaches lane_target."""
    Hh = H // 2
    g = max(1, pl.cdiv(lane_target, 2 * W))
    g = min(g, Hh)
    while Hh % g != 0:       # g must evenly split the half-height
        g -= 1
    return g


def _choose_tm(R, L, itemsize, target_block_bytes=2 << 20, min_steps=8):
    """Rows per grid step: ~2 MiB blocks, >= min_steps pipelined steps when possible,
    sublane multiple of 8, even step count preferred (2-TC chips)."""
    tm = max(8, target_block_bytes // (L * itemsize))
    tm = min(tm, max(8, pl.cdiv(R, min_steps)))    # keep the DMA pipeline deep enough
    tm = max(8, (tm // 8) * 8)
    if tm >= R:
        return R                                   # single full-extent block
    steps = pl.cdiv(R, tm)
    if steps % 2 == 1:                             # nudge toward an even grid (v7x: 2 TCs)
        alt = ((pl.cdiv(R, steps + 1) + 7) // 8) * 8
        if 0 < alt < tm and pl.cdiv(R, alt) % 2 == 0:
            tm = alt
    return tm


def _dwt_kernel(m_ref, x_ref, o_ref, *, precision):
    # One fused MXU matmul per block. Rows of x are g concatenated row pairs
    # [x[2h,:] | x[2h+1,:]]; columns of m are the four Haar subbands, so the
    # output rows are already [LL|LH|HL|HH] per height index: no concat, no
    # reshape, no strided loads, lane-dense stores.
    o_ref[...] = jnp.dot(
        x_ref[...], m_ref[...],
        preferred_element_type=jnp.float32,
        precision=precision,
    ).astype(o_ref.dtype)


def downsample_dwt(x, *, lane_target=128, target_block_bytes=2 << 20, min_steps=8):
    """x: (N, C, H, W). Returns [ll, lh, hl, hh], each (N, C, H//2, W//2)."""
    N, C, H, W = x.shape
    assert H % 2 == 0 and W % 2 == 0, "Haar DWT needs even spatial dims"
    Ho, Wo = H // 2, W // 2
    B = N * C

    g = _choose_group(H, W, lane_target)
    L = 2 * g * W                      # lane dim of the fused problem (>=128 when possible)
    R = (B * H) // (2 * g)             # super-rows
    itemsize = jnp.dtype(x.dtype).itemsize

    m_np = _haar_pair_matrix(W)
    if g > 1:
        m_np = np.kron(np.eye(g, dtype=np.float32), m_np)   # block-diagonal fill

    if jnp.dtype(x.dtype) == jnp.dtype(jnp.bfloat16):
        m = jnp.asarray(m_np, dtype=jnp.bfloat16)            # MXU-native; +-0.5 exact in bf16
        precision = jax.lax.Precision.DEFAULT
    else:
        m = jnp.asarray(m_np, dtype=jnp.float32)
        precision = jax.lax.Precision.HIGHEST                # bit-accurate f32 DWT

    x2 = x.reshape(R, L)               # free row-major view (H % 2g == 0 by construction)

    tm = _choose_tm(R, L, itemsize, target_block_bytes, min_steps)
    grid = (pl.cdiv(R, tm),)           # ragged final block is masked by Pallas

    cost = pl.CostEstimate(            # memory-bound: read + write the image once
        flops=2 * R * L * L,
        transcendentals=0,
        bytes_accessed=2 * R * L * itemsize + L * L * m.dtype.itemsize,
    )

    out2 = pl.pallas_call(
        functools.partial(_dwt_kernel, precision=precision),
        out_shape=jax.ShapeDtypeStruct((R, L), x.dtype),
        grid_spec=pltpu.PrefetchScalarGridSpec(
            num_scalar_prefetch=0,
            grid=grid,
            in_specs=[
                pl.BlockSpec((L, L), lambda i: (0, 0)),    # fused Haar filter (constant block)
                pl.BlockSpec((tm, L), lambda i: (i, 0)),   # input row slab
            ],
            out_specs=pl.BlockSpec((tm, L), lambda i: (i, 0)),
        ),
        compiler_params=pltpu.CompilerParams(
            dimension_semantics=("parallel",),
            # ~2 MiB blocks double-buffered + filter + f32 acc stays well under
            # this; explicit because v5e's scoped default is 16 MiB, and 32 MiB
            # leaves ample headroom on v7x's 64 MiB physical VMEM.
            vmem_limit_bytes=32 * 1024 * 1024,
        ),
        cost_estimate=cost,
    )(m, x2)

    # (R, L) -> (N, C, Ho, 4, Wo): each super-row chunk is [LL | LH | HL | HH].
    out5 = out2.reshape(N, C, Ho, 4, Wo)
    return [out5[..., 0, :], out5[..., 1, :], out5[..., 2, :], out5[..., 3, :]]


def _reference(x):
    """Pure-JAX reference of the Haar DWT_2D forward (f32)."""
    r = 1.0 / np.sqrt(2.0)
    x = x.astype(jnp.float32)
    x00 = x[:, :, 0::2, 0::2]
    x01 = x[:, :, 0::2, 1::2]
    x10 = x[:, :, 1::2, 0::2]
    x11 = x[:, :, 1::2, 1::2]
    lo0 = (x00 + x10) * r      # low over height (even cols)
    hi0 = (x00 - x10) * r      # high over height (even cols)
    lo1 = (x01 + x11) * r      # low over height (odd cols)
    hi1 = (x01 - x11) * r      # high over height (odd cols)
    ll = (lo0 + lo1) * r
    lh = (lo0 - lo1) * r
    hl = (hi0 + hi1) * r
    hh = (hi0 - hi1) * r
    return [ll, lh, hl, hh]


if __name__ == "__main__":
    key = jax.random.PRNGKey(0)
    x = jax.random.normal(key, (2, 4, 16, 16), dtype=jnp.float32)

    # f32 path (precision=HIGHEST on the MXU).
    subbands = [jax.block_until_ready(s) for s in downsample_dwt(x)]
    ref = _reference(x)
    for got, exp in zip(subbands, ref):
        assert got.shape == (2, 4, 8, 8), got.shape
        np.testing.assert_allclose(np.asarray(got), np.asarray(exp),
                                   rtol=1e-5, atol=1e-5)

    # bf16 path: operands stay bf16 on the MXU (no f32 upcast); looser tolerance.
    xb = x.astype(jnp.bfloat16)
    sub_b = [jax.block_until_ready(s) for s in downsample_dwt(xb)]
    ref_b = _reference(xb)
    for got, exp in zip(sub_b, ref_b):
        np.testing.assert_allclose(np.asarray(got.astype(jnp.float32)),
                                   np.asarray(exp), rtol=2e-2, atol=2e-2)

    print("KERNEL_OK")
</pallas_src>

<mosaic_0001>
module attributes {stable_mosaic.version = 11 : i64} {
  func.func @_dwt_kernel(%arg0: i32, %arg1: memref<128x128xf32, #tpu.memory_space<vmem>>, %arg2: memref<8x128xf32, #tpu.memory_space<vmem>>, %arg3: memref<8x128xf32, #tpu.memory_space<vmem>>) attributes {dimension_semantics = [#tpu.dimension_semantics<parallel>], iteration_bounds = array<i64: 2>, scalar_prefetch = 0 : i64, scratch_operands = 0 : i64, tpu.core_type = #tpu.core_type<tc>, window_params = [{pipeline_mode = #tpu.pipeline_mode<synchronous>, transform_indices = @transform_0, window_bounds = array<i64: 128, 128>}, {transform_indices = @transform_1, window_bounds = array<i64: 8, 128>}, {transform_indices = @transform_2, window_bounds = array<i64: 8, 128>}]} {
    %c0 = arith.constant 0 : index
    %c0_0 = arith.constant 0 : index
    %0 = vector.load %arg2[%c0, %c0_0] : memref<8x128xf32, #tpu.memory_space<vmem>>, vector<8x128xf32>
    %c0_1 = arith.constant 0 : index
    %c0_2 = arith.constant 0 : index
    %1 = vector.load %arg1[%c0_1, %c0_2] : memref<128x128xf32, #tpu.memory_space<vmem>>, vector<128x128xf32>
    %cst = arith.constant dense<0.000000e+00> : vector<8x128xf32>
    %2 = tpu.matmul %0, %1, %cst {dimension_numbers = #tpu.dot_dimension_numbers<[1], [0], [0], [1], [0, 0, 1, 1], [], []>, precision = #tpu.contract_precision<fp32>} : vector<8x128xf32>, vector<128x128xf32>, vector<8x128xf32> -> vector<8x128xf32>
    %c0_3 = arith.constant 0 : index
    %c0_4 = arith.constant 0 : index
    %3 = vector.load %arg3[%c0_3, %c0_4] : memref<8x128xf32, #tpu.memory_space<vmem>>, vector<8x128xf32>
    tpu.vector_store %arg3[%c0_3, %c0_4], %2 {strides = array<i32>} : memref<8x128xf32, #tpu.memory_space<vmem>>, vector<8x128xf32>,
    return
  }
  func.func @transform_0(%arg0: i32) -> (i32, i32) {
    %c0_i32 = arith.constant 0 : i32
    %c0_i32_0 = arith.constant 0 : i32
    %c0_i32_1 = arith.constant 0 : i32
    return %c0_i32, %c0_i32_0 : i32, i32
  }
  func.func @transform_1(%arg0: i32) -> (i32, i32) {
    %c0_i32 = arith.constant 0 : i32
    %c0_i32_0 = arith.constant 0 : i32
    return %arg0, %c0_i32 : i32, i32
  }
  func.func @transform_2(%arg0: i32) -> (i32, i32) {
    %c0_i32 = arith.constant 0 : i32
    %c0_i32_0 = arith.constant 0 : i32
    return %arg0, %c0_i32 : i32, i32
  }
}

</mosaic_0001>

<bundles_post_ra>
// kernel: tpu_custom_call.1
= control target key start
LH: loop header
LB: loop body
LE: loop exit
PB: predicated region body
PF: predicated region fallthrough
CT: control target
= control target key end

     0   :  { %7 = vsyncpa [#allocation3], 0  ;;  %s2073_s0 = inlined_call_operand.hbm [shape: f32[128,128], index: 0, kind: input, shape index: {}]   ;;  %s2074_s1 = inlined_call_operand.hbm [shape: f32[16,128], index: 1, kind: input, shape index: {}]   ;;  %s2075_s2 = inlined_call_operand.hbm [shape: f32[16,128], index: 2, kind: output, shape index: {}]  }
   0x1   :  { %8 = vsyncpa [#allocation6], 0 }
   0x2   :  { %10 = vsyncpa [#allocation6 + $0x1], 0 }
   0x3   :  { %11 = vsyncpa [#allocation4], 0 }
   0x4   :  { %13 = vsyncpa [#allocation4 + $0x1], 0  ;;  %s1623_s9 = smov 0   ;;  %s1625_s10 = smov 0  }
   0x5   :  { %s1627_s11 = smov 0   ;;  %s1629_s12 = smov 0  }
   0x6 LB: > { %s1644_s13 = sadd.s32 4294967295, %s1598_s12   ;;  %s929_s14 = sadd.s32 4294967294, %s1598_s12   ;;  %s1598_s12 = sphi %s1629_s12, %s2095_s12   ;;  %s1594_s11 = sphi %s1627_s11, %s2094_s11   ;;  %s1590_s10 = sphi %s1625_s10, %s2093_s10   ;;  %s1586_s9 = sphi %s1623_s9, %s2092_s9  }
   0x7   : > { %p60_p0 = scmp.ne.s32.totalorder %s1590_s10, %s1586_s9  ;;  %p2076_p1 = scmp.eq.s32.totalorder %s1644_s13, 0 }
   0x8   : > { %p90_p3 = scmp.eq.s32.totalorder %s929_s14, 1  ;;  %p930_p5 = scmp.ge.s32.totalorder %s1598_s12, 1 }
   0x9   : > { %p1653_p4 = por %p2076_p1, %p60_p0  ;;  %p97_p7 = scmp.lt.s32.totalorder %s1598_s12, 3 }
   0xa   : > { %p1658_p6 = por %p90_p3, %p60_p0  ;;  %s1600_s18 = smov [#allocation2]  }
   0xb   : > { %s2079_s15 = scalar_select %p1653_p4, 1, 0 }
   0xc   : > { %s2080_s16 = scalar_select %p1658_p6, 1, 0 }
   0xd   : > { %p1663_p8 = pnand %p930_p5, %p97_p7  ;;  %s109_s19 = sshll.u32 %s1600_s18, 4  ;;  %s1667_s19 = int_to_ptr.vmem [resolvable:$true] %s109_s19 }
   0xe   : > { %s1679_s21 = sadd.s32 1, %s1598_s12   ;;  %s47_s22 = sadd.s32 1, %s1594_s11 }
   0xf   : > { %s2081_s17 = scalar_select %p1663_p8, 1, 0 }
  0x10   : > { %p1416_p9 = pneg %p1663_p8  ;;  %s44_s23 = ssub.s32 %s1598_s12, %s1679_s21 }
  0x11   : > { %s1470_s26 = scalar_lea.hbm %s2073_s0, 2048 }
  0x12   : > { %p1674_p11 = pnand %p1416_p9, %p2076_p1  ;;  %p1471_p12 = scmp.ne.s32.totalorder %s2073_s0, %s1470_s26 }
  0x13   : > { %p1477_p5 = scmp.lt.u32.totalorder %s1470_s26, %s2073_s0 }
  0x14   : > { %p1472_p13 = pneg %p1674_p11 }
  0x16   : > { %p1473_p0 = pnand %p1472_p13, %p1471_p12 }
  0x18   : > { %p1474_p3 = pneg %p1473_p0 }
  0x1a   : > { %p1479_p7 = pnand %p1477_p5, %p1474_p3 }
  0x1c   : > { %1482 = shalt.err (!%p1479_p7)
}
  0x1d   : > { %s1483_s3 = scalar_lea.vmem %s1667_s19, 2048  ;;  %p1491_p2 = scmp.lt.s32.totalorder %s1667_s19, %s1667_s19 }
  0x1e   : > { %p1484_p9 = scmp.ne.s32.totalorder %s1667_s19, %s1483_s3  ;;  %p1492_p6 = scmp.lt.s32.totalorder %s1483_s3, %s1483_s3 }
  0x20   : > { %p1486_p10 = pnand %p1484_p9, %p1472_p13  ;;  %p1493_p4 = por %p1492_p6, %p1491_p2 }
  0x22   : > { %p1487_p1 = pneg %p1486_p10 }
  0x24   : > { %p1494_p8 = pnand %p1493_p4, %p1487_p1 }
  0x26   : > { %1497 = shalt.err (!%p1494_p8)
}
  0x27   : > { %s1601_s4 = smov 128   ;;  %s1602_s5 = smov 8  }
  0x28   : > { %1419 = dma.hbm_to_vmem [thread:$0]  (!%p1674_p11), %s2073_s0, 2048, %s1667_s19, [#allocation3], %s1601_s4, %s1601_s4, %s1602_s5  }
  0x29   : > { %p45_p2 = scmp.eq.s32.totalorder %s44_s23, 0  ;;  %p54_p1 = scmp.ne.s32.totalorder %s1594_s11, %s1590_s10 }
  0x2a   : > { %p55_p4 = scmp.eq.s32.totalorder %s1598_s12, 0  ;;  %p1429_p6 = scmp.lt.s32.totalorder %s1598_s12, 2 }
  0x2b   : > { %s1710_s8 = scalar_select %p45_p2, %s1594_s11, %s47_s22  }
  0x2c   : > { %p56_p8 = por %p55_p4, %p54_p1  ;;  %p2083_p10 = scmp.eq.s32.totalorder %s1644_s13, 1 }
  0x2d   : > { %s123_s18 = sand.u32 1, %s1594_s11   ;;  %s934_s24 = sshll.u32 %s1598_s12, 7 }
  0x2e   : > { %p1714_p12 = por %p2083_p10, %p54_p1  ;;  %s933_s25 = sshll.u32 %s123_s18, 3 }
  0x2f   : > { %s1723_s27 = scalar_lea.hbm %s2074_s1, %s934_s24  ;;  %s127_s19 = scalar_lea.vmem [#allocation5], %s933_s25 }
  0x30   : > { %s134_s22 = sshll.u32 %s127_s19, 4  ;;  %p1725_p11 = pnand %p1429_p6, %p56_p8  ;;  %s1729_s22 = int_to_ptr.vmem [resolvable:$true] %s134_s22 }
  0x31   : > { %s124_s28 = scalar_lea.sflag [#allocation6], %s123_s18  ;;  %s1498_s29 = scalar_lea.hbm %s1723_s27, 128 }
  0x32   : > { %p1499_p13 = scmp.ne.s32.totalorder %s1723_s27, %s1498_s29  ;;  %p1500_p0 = pneg %p1725_p11 }
  0x33   : > { %s1503_s4 = scalar_lea.hbm %s2074_s1, 256  ;;  %p1504_p7 = scmp.lt.u32.totalorder %s1723_s27, %s2074_s1 }
  0x34   : > { %p1501_p3 = pnand %p1500_p0, %p1499_p13  ;;  %p1505_p9 = scmp.lt.u32.totalorder %s1503_s4, %s1498_s29 }
  0x35   : > { %p1507_p1 = scmp.lt.u32.totalorder %s1498_s29, %s1723_s27 }
  0x36   : > { %p1502_p5 = pneg %p1501_p3  ;;  %p1506_p2 = por %p1505_p9, %p1504_p7 }
  0x38   : > { %p1508_p4 = por %p1507_p1, %p1506_p2 }
  0x3a   : > { %p1509_p6 = pnand %p1508_p4, %p1502_p5 }
  0x3c   : > { %1512 = shalt.err (!%p1509_p6)
}
  0x3d   : > { %s1513_s7 = scalar_lea.vmem %s1729_s22, 128  ;;  %s1603_s18 = smov [#allocation5]  }
  0x3e   : > { %p1514_p8 = scmp.ne.s32.totalorder %s1729_s22, %s1513_s7  ;;  %s1518_s24 = sshll.u32 %s1603_s18, 4  ;;  %s1519_s24 = int_to_ptr.vmem [resolvable:$false] %s1518_s24 }
  0x3f   : > { %s1520_s25 = scalar_lea.vmem %s1519_s24, 256  ;;  %p1521_p3 = scmp.lt.s32.totalorder %s1729_s22, %s1519_s24 }
  0x40   : > { %p1516_p10 = pnand %p1514_p8, %p1500_p0  ;;  %p1522_p7 = scmp.lt.s32.totalorder %s1520_s25, %s1513_s7 }
  0x42   : > { %p1517_p13 = pneg %p1516_p10  ;;  %p1523_p9 = por %p1522_p7, %p1521_p3 }
  0x44   : > { %p1524_p2 = pnand %p1523_p9, %p1517_p13 }
  0x46   : > { %1527 = shalt.err (!%p1524_p2)
}
  0x47   : > { %1423 = dma.hbm_to_vmem [thread:$0]  (!%p1725_p11), %s1723_s27, 128, %s1729_s22, %s124_s28  }
  0x48   : > { %p2086_p5 = scmp.ne.s32.totalorder %s2081_s17, 0 }
  0x49   : > { %p2087_p0 = scmp.eq.s32.totalorder (!%p2086_p5), %s1644_s13, 0 }
  0x4a   : > { %143 = sbr.rel (%p2086_p5) target bundleno = 414 (0x19e), region = 28 }
  0x51   : > { %1573 = dma.done.wait (%p2087_p0), [#allocation3], 2048   ;;  %p2088_p1 = pmov %p2087_p0 }
  0x52   : > { %s1763_s20 = sand.u32 1, %s1590_s10   ;;  %p2089_p11 = scmp.ne.s32.totalorder %s2079_s15, 0 }
  0x53   : > { %1575 = vsyncadd (%p2088_p1), [#allocation3], 4294965248  ;;  %s937_s26 = sshll.u32 %s1763_s20, 3  ;;  %s150_s19 = scalar_lea.sflag [#allocation6], %s1763_s20 }
  0x54   : > { %s1769_s27 = scalar_lea.vmem [#allocation5], %s937_s26 }
  0x55   : > { %1577 = dma.done.wait (%p2089_p11), %s150_s19, 128  }
  0x56   : > { %1579 = vsyncadd (%p2089_p11), %s150_s19, 4294967168  ;;  %v1604_v0 = vmov 0.0|0.0   ;;  %vm1605_vm0 = vmmov 0   ;;  %v1606_v1 = vmov 0.0   ;;  %v175_v2 = vld [vmem:[#allocation2] sm:$0xff]  ;;  %v176_v3 = vld [vmem:[#allocation2 + $0x8] sm:$0xff] }
  0x57   : > { %1255 = vmatprep.subr.bf16.mxu1 %v1604_v0  ;;  %1327 = vmatprep.subr.bf16.mxu0 %v1604_v0  ;;  %v177_v4 = vld [vmem:[#allocation2 + $0x10] sm:$0xff]  ;;  %v192_v5 = vand.u32 4294901760, %v175_v2  ;;  %v195_v6 = vand.u32 4294901760, %v176_v3  ;;  %v178_v7 = vld [vmem:[#allocation2 + $0x18] sm:$0xff]  ;;  %v179_v10 = vld [vmem:[#allocation2 + $0x20] sm:$0xff]  ;;  %s940_s15 = sshll.u32 %s1644_s13, 7 }
  0x58   : > { %1077 = vmatprep.mubr.msk.f32.mxu1 %vm1605_vm0, %v1606_v1  ;;  %1182 = vmatprep.mubr.msk.f32.mxu0 %vm1605_vm0, %v1606_v1  ;;  %v198_v8 = vand.u32 4294901760, %v177_v4  ;;  %v201_v9 = vand.u32 4294901760, %v178_v7  ;;  %v180_v11 = vld [vmem:[#allocation2 + $0x28] sm:$0xff]  ;;  %v204_v14 = vand.u32 4294901760, %v179_v10  ;;  %v181_v16 = vld [vmem:[#allocation2 + $0x30] sm:$0xff]  ;;  %v182_v17 = vld [vmem:[#allocation2 + $0x38] sm:$0xff]  ;;  %s2029_s29 = scalar_lea.hbm %s2075_s2, %s940_s15 }
  0x59   : > { %v1781_v12 = vpack.c.bf16 %v195_v6, %v192_v5  ;;  %v207_v15 = vand.u32 4294901760, %v180_v11  ;;  %v210_v19 = vand.u32 4294901760, %v181_v16  ;;  %v213_v20 = vand.u32 4294901760, %v182_v17  ;;  %v1795_v21 = vld [vmem:[#allocation2 + $0x40] sm:$0xff]  ;;  %v1797_v22 = vld [vmem:[#allocation2 + $0x48] sm:$0xff]  ;;  %v1808_v27 = vld [vmem:[#allocation2 + $0x50] sm:$0xff] }
  0x5a   : > { %v1785_v13 = vpack.c.bf16 %v201_v9, %v198_v8  ;;  %v216_v24 = vand.u32 4294901760, %v1795_v21  ;;  %v219_v25 = vand.u32 4294901760, %v1797_v22  ;;  %v174_v26 = vld [vmem:[%s1769_s27] sm:$0xff]  ;;  %v1810_v28 = vld [vmem:[#allocation2 + $0x58] sm:$0xff]  ;;  %v1812_v29 = vsub.f32 %v175_v2, %v192_v5  ;;  %v1847_v43 = vld [vmem:[#allocation2 + $0x70] sm:$0xff]  ;;  %s173_s17 = scalar_lea.vmem [#allocation7], %s937_s26 }
  0x5b   : > { %1257 = vmatpush3.bf16.msra.mxu1 %v1781_v12  ;;  %1329 = vmatpush3.bf16.msra.mxu0 %v1781_v12  ;;  %v1791_v18 = vpack.c.bf16 %v207_v15, %v204_v14  ;;  %v1801_v23 = vpack.c.bf16 %v213_v20, %v210_v19  ;;  %v1814_v30 = vand.u32 4294901760, %v174_v26  ;;  %v1816_v31 = vsub.f32 %v176_v3, %v195_v6  ;;  %v1824_v35 = vld [vmem:[#allocation2 + $0x60] sm:$0xff]  ;;  %v1828_v36 = vld [vmem:[#allocation2 + $0x68] sm:$0xff]  ;;  %v1849_v44 = vld [vmem:[#allocation2 + $0x78] sm:$0xff]  ;;  %s847_s22 = sshll.u32 %s173_s17, 4  ;;  %s834_s13 = scalar_lea.sflag [#allocation4], %s1763_s20  ;;  %s2031_s22 = int_to_ptr.vmem [resolvable:$true] %s847_s22 }
  0x5c   : > { %1258 = vmatprep.subr.bf16.mxu1 %v1604_v0  ;;  %1330 = vmatprep.subr.bf16.mxu0 %v1604_v0  ;;  %v1820_v32 = vpack.c.bf16 %v219_v25, %v216_v24  ;;  %v222_v33 = vand.u32 4294901760, %v1808_v27  ;;  %v225_v34 = vand.u32 4294901760, %v1810_v28  ;;  %v1830_v37 = vsub.f32 %v177_v4, %v198_v8  ;;  %s1528_s30 = scalar_lea.vmem %s2031_s22, 128  ;;  %s1607_s3 = smov [#allocation7]  }
  0x5d   : > { %v1832_v38 = vsub.f32 %v178_v7, %v201_v9  ;;  %v228_v39 = vand.u32 4294901760, %v1824_v35  ;;  %v1836_v40 = vsub.f32 %v174_v26, %v1814_v30  ;;  %v231_v42 = vand.u32 4294901760, %v1828_v36  ;;  %p1529_p4 = scmp.ne.s32.totalorder %s2031_s22, %s1528_s30  ;;  %s1532_s4 = sshll.u32 %s1607_s3, 4  ;;  %s1533_s4 = int_to_ptr.vmem [resolvable:$false] %s1532_s4 }
  0x5e   : > { %v1844_v41 = vpack.c.bf16 %v225_v34, %v222_v33  ;;  %v285_v45 = vand.u32 4294901760, %v1812_v29  ;;  %v292_v46 = vand.u32 4294901760, %v1816_v31  ;;  %v1855_v47 = vsub.f32 %v179_v10, %v204_v14  ;;  %s1534_s5 = scalar_lea.vmem %s1533_s4, 256  ;;  %p1535_p10 = scmp.lt.s32.totalorder %s2031_s22, %s1533_s4 }
  0x5f   : > { %1260 = vmatpush3.bf16.msra.mxu1 %v1785_v13  ;;  %1332 = vmatpush3.bf16.msra.mxu0 %v1785_v13  ;;  %v1857_v48 = vsub.f32 %v180_v11, %v207_v15  ;;  %v234_v49 = vand.u32 4294901760, %v1847_v43  ;;  %v237_v50 = vand.u32 4294901760, %v1849_v44  ;;  %v274_v51 = vand.u32 4294901760, %v1836_v40  ;;  %p1530_p6 = pnand %p1529_p4, %p1714_p12  ;;  %p1536_p13 = scmp.lt.s32.totalorder %s1534_s5, %s1528_s30 }
  0x60   : > { %1261 = vmatprep.subr.bf16.mxu1 %v1604_v0  ;;  %1333 = vmatprep.subr.bf16.mxu0 %v1604_v0  ;;  %v299_v52 = vand.u32 4294901760, %v1830_v37  ;;  %v1869_v53 = vpack.c.bf16 %v231_v42, %v228_v39  ;;  %v286_v54 = vsub.f32 %v1812_v29, %v285_v45  ;;  %v293_v55 = vsub.f32 %v1816_v31, %v292_v46 }
  0x61   : > { %v306_v56 = vand.u32 4294901760, %v1832_v38  ;;  %v1876_v57 = vsub.f32 %v181_v16, %v210_v19  ;;  %v1878_v58 = vsub.f32 %v182_v17, %v213_v20  ;;  %v275_v59 = vsub.f32 %v1836_v40, %v274_v51  ;;  %p1531_p8 = pneg %p1530_p6  ;;  %p1537_p3 = por %p1536_p13, %p1535_p10 }
  0x62   : > { %v300_v60 = vsub.f32 %v1830_v37, %v299_v52  ;;  %v313_v61 = vand.u32 4294901760, %v1855_v47  ;;  %v320_v62 = vand.u32 4294901760, %v1857_v48  ;;  %v1890_v63 = vpack.c.bf16 %v237_v50, %v234_v49 }
  0x63   : > { %1263 = vmatpush3.bf16.msra.mxu1 %v1791_v18  ;;  %1335 = vmatpush3.bf16.msra.mxu0 %v1791_v18  ;;  %v287_v2 = vand.u32 4294901760, %v286_v54  ;;  %v294_v3 = vand.u32 4294901760, %v293_v55  ;;  %v307_v4 = vsub.f32 %v1832_v38, %v306_v56  ;;  %v1896_v5 = vsub.f32 %v1795_v21, %v216_v24  ;;  %p1538_p7 = pnand %p1537_p3, %p1531_p8 }
  0x64   : > { %1264 = vmatprep.subr.bf16.mxu1 %v1604_v0  ;;  %1336 = vmatprep.subr.bf16.mxu0 %v1604_v0  ;;  %v1899_v6 = vsub.f32 %v1797_v22, %v219_v25  ;;  %v1352_v7 = vpack.c.bf16 %v292_v46, %v285_v45  ;;  %v276_v8 = vand.u32 4294901760, %v275_v59  ;;  %v301_v9 = vand.u32 4294901760, %v300_v60 }
  0x65   : > { %v314_v10 = vsub.f32 %v1855_v47, %v313_v61  ;;  %v321_v11 = vsub.f32 %v1857_v48, %v320_v62  ;;  %v1280_v14 = vpack.c.bf16 %v294_v3, %v287_v2  ;;  %v308_v15 = vand.u32 4294901760, %v307_v4 }
  0x66   : > { %v327_v16 = vand.u32 4294901760, %v1876_v57  ;;  %v334_v17 = vand.u32 4294901760, %v1878_v58  ;;  %v1912_v19 = vsub.f32 %v1808_v27, %v222_v33  ;;  %v1917_v20 = vsub.f32 %v1810_v28, %v225_v34 }
  0x67   : > { %1266 = vmatpush3.bf16.msra.mxu1 %v1801_v23  ;;  %1338 = vmatpush3.bf16.msra.mxu0 %v1801_v23  ;;  %v1355_v21 = vpack.c.bf16 %v306_v56, %v299_v52  ;;  %v315_v22 = vand.u32 4294901760, %v314_v10  ;;  %v322_v24 = vand.u32 4294901760, %v321_v11  ;;  %v341_v25 = vand.u32 4294901760, %v1896_v5 }
  0x68   : > { %1267 = vmatprep.subr.bf16.mxu1 %v1604_v0  ;;  %1339 = vmatprep.subr.bf16.mxu0 %v1604_v0  ;;  %v1283_v26 = vpack.c.bf16 %v308_v15, %v301_v9  ;;  %v328_v45 = vsub.f32 %v1876_v57, %v327_v16  ;;  %v335_v27 = vsub.f32 %v1878_v58, %v334_v17  ;;  %v348_v33 = vand.u32 4294901760, %v1899_v6 }
  0x69   : > { %v1928_v28 = vsub.f32 %v1824_v35, %v228_v39  ;;  %v1933_v34 = vsub.f32 %v1828_v36, %v231_v42  ;;  %v1286_v46 = vpack.c.bf16 %v322_v24, %v315_v22  ;;  %v342_v52 = vsub.f32 %v1896_v5, %v341_v25 }
  0x6a   : > { %v355_v54 = vand.u32 4294901760, %v1912_v19  ;;  %v329_v35 = vand.u32 4294901760, %v328_v45  ;;  %v336_v39 = vand.u32 4294901760, %v335_v27  ;;  %v349_v55 = vsub.f32 %v1899_v6, %v348_v33 }
  0x6b   : > { %1269 = vmatpush3.bf16.msra.mxu1 %v1820_v32  ;;  %1341 = vmatpush3.bf16.msra.mxu0 %v1820_v32  ;;  %v362_v36 = vand.u32 4294901760, %v1917_v20  ;;  %v1948_v42 = vsub.f32 %v1847_v43, %v234_v49  ;;  %v1953_v56 = vsub.f32 %v1849_v44, %v237_v50  ;;  %v1361_v59 = vpack.c.bf16 %v334_v17, %v327_v16 }
  0x6c   : > { %1270 = vmatprep.subr.bf16.mxu1 %v1604_v0  ;;  %1342 = vmatprep.subr.bf16.mxu0 %v1604_v0  ;;  %v343_v60 = vand.u32 4294901760, %v342_v52  ;;  %v1289_v2 = vpack.c.bf16 %v336_v39, %v329_v35  ;;  %v350_v3 = vand.u32 4294901760, %v349_v55  ;;  %v376_v43 = vand.u32 4294901760, %v1933_v34 }
  0x6d   : > { %v363_v4 = vsub.f32 %v1917_v20, %v362_v36  ;;  %v1364_v44 = vpack.c.bf16 %v348_v33, %v341_v25  ;;  %v390_v11 = vand.u32 4294901760, %v1953_v56 }
  0x6e   : > { %v377_v10 = vsub.f32 %v1933_v34, %v376_v43 }
  0x6f   : > { %1272 = vmatpush3.bf16.msra.mxu1 %v1844_v41  ;;  %1344 = vmatpush3.bf16.msra.mxu0 %v1844_v41  ;;  %v364_v9 = vand.u32 4294901760, %v363_v4  ;;  %v391_v22 = vsub.f32 %v1953_v56, %v390_v11 }
  0x70   : > { %1273 = vmatprep.subr.bf16.mxu1 %v1604_v0  ;;  %1345 = vmatprep.subr.bf16.mxu0 %v1604_v0  ;;  %v378_v17 = vand.u32 4294901760, %v377_v10 }
  0x71   : > { %v392_v45 = vand.u32 4294901760, %v391_v22 }
  0x73   : > { %1275 = vmatpush3.bf16.msra.mxu1 %v1869_v53  ;;  %1347 = vmatpush3.bf16.msra.mxu0 %v1869_v53 }
  0x74   : > { %1276 = vmatprep.subr.bf16.mxu1 %v1604_v0  ;;  %1348 = vmatprep.subr.bf16.mxu0 %v1604_v0 }
  0x77   : > { %1278 = vmatpush3.bf16.msra.mxu1 %v1890_v63  ;;  %1350 = vmatpush3.bf16.msra.mxu0 %v1890_v63 }
  0x78   : > { %1279 = vmatprep.subr.bf16.mxu1 %v1604_v0  ;;  %1351 = vmatprep.subr.bf16.mxu0 %v1604_v0 }
  0x7a   : > { %1078 = vmatmul.mubr.f32.vlgmr.msra.gmra.mrb[0].mxu1 %v276_v8  ;;  %1183 = vmatmul.mubr.f32.vlgmr.msra.gmra.mrb[0].mxu0 %v274_v51  ;;  %v1358_v51 = vpack.c.bf16 %v320_v62, %v313_v61  ;;  %v356_v61 = vsub.f32 %v1912_v19, %v355_v54  ;;  %v369_v62 = vand.u32 4294901760, %v1928_v28  ;;  %v1292_v8 = vpack.c.bf16 %v350_v3, %v343_v60 }
  0x7b   : > { %1281 = vmatpush3.bf16.msra.mxu1 %v1280_v14  ;;  %1353 = vmatpush3.bf16.msra.mxu0 %v1352_v7  ;;  %v383_v7 = vand.u32 4294901760, %v1948_v42  ;;  %v1367_v14 = vpack.c.bf16 %v362_v36, %v355_v54 }
  0x7c   : > { %1282 = vmatprep.subr.bf16.mxu1 %v1604_v0  ;;  %1354 = vmatprep.subr.bf16.mxu0 %v1604_v0  ;;  %v357_v49 = vand.u32 4294901760, %v356_v61  ;;  %v370_v50 = vsub.f32 %v1928_v28, %v369_v62  ;;  %v1370_v25 = vpack.c.bf16 %v376_v43, %v369_v62 }
  0x7d   : > { %1112 = vmatprep.mubr.msk.f32.mxu1 %vm1605_vm0, %v1606_v1  ;;  %1217 = vmatprep.mubr.msk.f32.mxu0 %vm1605_vm0, %v1606_v1  ;;  %v1373_v33 = vpack.c.bf16 %v390_v11, %v383_v7 }
  0x7e   : > { %v371_v15 = vand.u32 4294901760, %v370_v50  ;;  %v1295_v16 = vpack.c.bf16 %v364_v9, %v357_v49 }
  0x7f   : > { %1284 = vmatpush3.bf16.msra.mxu1 %v1283_v26  ;;  %1356 = vmatpush3.bf16.msra.mxu0 %v1355_v21  ;;  %v384_v21 = vsub.f32 %v1948_v42, %v383_v7 }
  0x80   : > { %1285 = vmatprep.subr.bf16.mxu1 %v1604_v0  ;;  %1357 = vmatprep.subr.bf16.mxu0 %v1604_v0  ;;  %v1298_v24 = vpack.c.bf16 %v378_v17, %v371_v15 }
  0x81   : > { %v385_v26 = vand.u32 4294901760, %v384_v21 }
  0x83   : > { %1287 = vmatpush3.bf16.msra.mxu1 %v1286_v46  ;;  %1359 = vmatpush3.bf16.msra.mxu0 %v1358_v51  ;;  %v1301_v27 = vpack.c.bf16 %v392_v45, %v385_v26  ;;  %v1304_v46 = vpack.c.bf16 %v1816_v31, %v1812_v29  ;;  %v1307_v51 = vpack.c.bf16 %v1832_v38, %v1830_v37 }
  0x84   : > { %1288 = vmatprep.subr.bf16.mxu1 %v1604_v0  ;;  %1360 = vmatprep.subr.bf16.mxu0 %v1604_v0  ;;  %v1310_v29 = vpack.c.bf16 %v1857_v48, %v1855_v47 }
  0x87   : > { %1290 = vmatpush3.bf16.msra.mxu1 %v1289_v2  ;;  %1362 = vmatpush3.bf16.msra.mxu0 %v1361_v59 }
  0x88   : > { %1291 = vmatprep.subr.bf16.mxu1 %v1604_v0  ;;  %1363 = vmatprep.subr.bf16.mxu0 %v1604_v0 }
  0x8b   : > { %1293 = vmatpush3.bf16.msra.mxu1 %v1292_v8  ;;  %1365 = vmatpush3.bf16.msra.mxu0 %v1364_v44 }
  0x8c   : > { %1294 = vmatprep.subr.bf16.mxu1 %v1604_v0  ;;  %1366 = vmatprep.subr.bf16.mxu0 %v1604_v0 }
  0x8f   : > { %1296 = vmatpush3.bf16.msra.mxu1 %v1295_v16  ;;  %1368 = vmatpush3.bf16.msra.mxu0 %v1367_v14 }
  0x90   : > { %1297 = vmatprep.subr.bf16.mxu1 %v1604_v0  ;;  %1369 = vmatprep.subr.bf16.mxu0 %v1604_v0 }
  0x93   : > { %1299 = vmatpush3.bf16.msra.mxu1 %v1298_v24  ;;  %1371 = vmatpush3.bf16.msra.mxu0 %v1370_v25 }
  0x94   : > { %1300 = vmatprep.subr.bf16.mxu1 %v1604_v0  ;;  %1372 = vmatprep.subr.bf16.mxu0 %v1604_v0 }
  0x97   : > { %1302 = vmatpush3.bf16.msra.mxu1 %v1301_v27  ;;  %1374 = vmatpush3.bf16.msra.mxu0 %v1373_v33 }
  0x98   : > { %1303 = vmatprep.subr.bf16.mxu1 %v1604_v0  ;;  %1375 = vmatprep.subr.bf16.mxu0 %v1604_v0 }
  0x9a   : > { %1113 = vmatmul.mubr.f32.vlgmr.msra.gmra.mrb[0].mxu1 %v1814_v30  ;;  %1218 = vmatmul.mubr.f32.vlgmr.msra.gmra.mrb[0].mxu0 %v1814_v30 }
  0x9b   : > { %1305 = vmatpush3.bf16.msra.mxu1 %v1304_v46  ;;  %1377 = vmatpush3.bf16.msra.mxu0 %v1781_v12  ;;  %v1313_v12 = vpack.c.bf16 %v1878_v58, %v1876_v57 }
  0x9c   : > { %1306 = vmatprep.subr.bf16.mxu1 %v1604_v0  ;;  %1378 = vmatprep.subr.bf16.mxu0 %v1604_v0 }
  0x9d   : > { %1147 = vmatprep.mubr.msk.f32.mxu1 %vm1605_vm0, %v1606_v1  ;;  %1252 = vmatprep.mubr.msk.f32.mxu0 %vm1605_vm0, %v1606_v1  ;;  %v1316_v1 = vpack.c.bf16 %v1899_v6, %v1896_v5 }
  0x9f   : > { %1308 = vmatpush3.bf16.msra.mxu1 %v1307_v51  ;;  %1380 = vmatpush3.bf16.msra.mxu0 %v1785_v13  ;;  %v1319_v13 = vpack.c.bf16 %v1917_v20, %v1912_v19 }
  0xa0   : > { %1309 = vmatprep.subr.bf16.mxu1 %v1604_v0  ;;  %1381 = vmatprep.subr.bf16.mxu0 %v1604_v0 }
  0xa3   : > { %1311 = vmatpush3.bf16.msra.mxu1 %v1310_v29  ;;  %1383 = vmatpush3.bf16.msra.mxu0 %v1791_v18  ;;  %v1322_v18 = vpack.c.bf16 %v1933_v34, %v1928_v28 }
  0xa4   : > { %1312 = vmatprep.subr.bf16.mxu1 %v1604_v0  ;;  %1384 = vmatprep.subr.bf16.mxu0 %v1604_v0 }
  0xa7   : > { %1314 = vmatpush3.bf16.msra.mxu1 %v1313_v12  ;;  %1386 = vmatpush3.bf16.msra.mxu0 %v1801_v23  ;;  %v1325_v23 = vpack.c.bf16 %v1953_v56, %v1948_v42 }
  0xa8   : > { %1315 = vmatprep.subr.bf16.mxu1 %v1604_v0  ;;  %1387 = vmatprep.subr.bf16.mxu0 %v1604_v0 }
  0xab   : > { %1317 = vmatpush3.bf16.msra.mxu1 %v1316_v1  ;;  %1389 = vmatpush3.bf16.msra.mxu0 %v1820_v32 }
  0xac   : > { %1318 = vmatprep.subr.bf16.mxu1 %v1604_v0  ;;  %1390 = vmatprep.subr.bf16.mxu0 %v1604_v0 }
  0xaf   : > { %1320 = vmatpush3.bf16.msra.mxu1 %v1319_v13  ;;  %1392 = vmatpush3.bf16.msra.mxu0 %v1844_v41 }
  0xb0   : > { %1321 = vmatprep.subr.bf16.mxu1 %v1604_v0  ;;  %1393 = vmatprep.subr.bf16.mxu0 %v1604_v0 }
  0xb3   : > { %1323 = vmatpush3.bf16.msra.mxu1 %v1322_v18  ;;  %1395 = vmatpush3.bf16.msra.mxu0 %v1869_v53 }
  0xb4   : > { %1324 = vmatprep.subr.bf16.mxu1 %v1604_v0  ;;  %1396 = vmatprep.subr.bf16.mxu0 %v1604_v0 }
  0xb7   : > { %1326 = vmatpush3.bf16.msra.mxu1 %v1325_v23  ;;  %1398 = vmatpush3.bf16.msra.mxu0 %v1890_v63 }
  0xba   : > { %1148 = vmatmul.mubr.f32.vlgmr.msra.gmra.mrb[0].mxu1 %v1836_v40  ;;  %1253 = vmatmul.mubr.f32.vlgmr.msra.gmra.mrb[0].mxu0 %v1814_v30 }
 0x18d   : > { %v533_v31 = vpop.f32.mrb[0].mxu1  ;;  %v828_v32 = vpop.f32.mrb[0].mxu0 }
 0x18e   : > { %v1399_v37 = vadd.f32 %v828_v32, %v533_v31  ;;  %v1149_v38 = vpop.f32.mrb[1].mxu1  ;;  %v1254_v41 = vpop.f32.mrb[1].mxu0 }
 0x190   : > { %832 = vst [vmem:[%s173_s17] sm:$0xff] %v1399_v37 }
 0x191   : > { %1541 = shalt.err (!%p1538_p7)
}
 0x192   : > { %s1542_s6 = scalar_lea.hbm %s2029_s29, 128  ;;  %s1546_s24 = scalar_lea.hbm %s2075_s2, 256 }
 0x193   : > { %p1543_p9 = scmp.ne.s32.totalorder %s2029_s29, %s1542_s6  ;;  %p1547_p0 = scmp.lt.u32.totalorder %s2029_s29, %s2075_s2 }
 0x194   : > { %p1548_p1 = scmp.lt.u32.totalorder %s1546_s24, %s1542_s6  ;;  %p1550_p4 = scmp.lt.u32.totalorder %s1542_s6, %s2029_s29 }
 0x195   : > { %p1544_p2 = pnand %p1543_p9, %p1714_p12 }
 0x196   : > { %p1549_p11 = por %p1548_p1, %p1547_p0 }
 0x197   : > { %p1545_p5 = pneg %p1544_p2 }
 0x198   : > { %p1551_p6 = por %p1550_p4, %p1549_p11 }
 0x19a   : > { %p1552_p8 = pnand %p1551_p6, %p1545_p5 }
 0x19c   : > { %1555 = shalt.err (!%p1552_p8)
}
 0x19d   : > { %1414 = dma.vmem_to_hbm [thread:$0]  (%p1714_p12), %s2031_s22, 128, %s2029_s29, %s834_s13  }
 0x19e PF: > { %s859_s26 = sand.u32 1, %s1586_s9   ;;  %p2090_p10 = scmp.ne.s32.totalorder %s2080_s16, 0 }
 0x19f   : > { %p2091_p13 = scmp.ge.s32.totalorder %s1598_s12, 2  ;;  %s860_s19 = scalar_lea.sflag [#allocation4], %s859_s26 }
 0x1a1   : > { %p1425_p3 = pnand %p2091_p13, %p2090_p10 }
 0x1a3   : > { %1581 = dma.done.wait (!%p1425_p3), %s860_s19, 128  }
 0x1a4   : > { %1583 = vsyncadd (!%p1425_p3), %s860_s19, 4294967168  ;;  %p16_p7 = scmp.ge.s32.totalorder %s1679_s21, 4   ;;  %s2092_s9 = smov %s1590_s10 }
 0x1a5   : > { %s2093_s10 = smov %s1594_s11  ;;  %s2094_s11 = smov %s1710_s8 }
 0x1a6   : > { %s2095_s12 = smov %s1679_s21  ;;  %18 = sbr.rel (!%p16_p7) target bundleno = 6 (0x6), region = 78 }
 0x1ad   :  { %865 = vsyncpa [#allocation3], 1 }
 0x1ae   :  { %867 = vsyncpa [#allocation3 + $0x1], 1 }
 0x1af   :  { %868 = vsyncpa [#allocation6], 1 }
 0x1b0   :  { %870 = vsyncpa [#allocation6 + $0x1], 1 }
 0x1b1   :  { %871 = vsyncpa [#allocation4], 1 }
 0x1b2   :  { %873 = vsyncpa [#allocation4 + $0x1], 1 }

</bundles_post_ra>
